<compile_context>
chip_gen: v6e
topology: v6e:2x2x1
jax: 0.10.0
libtpu: 0.0.40
codegen_flags: <defaults>
</compile_context>

<pallas_src>
import functools
import math

import jax
import jax.numpy as jnp
from jax.experimental import pallas as pl
from jax.experimental.pallas import tpu as pltpu


def _cond_conv_kernel(idx_ref, x_ref, w_ref, o_ref, patch_ref, *,
                      Wp, Ho, Kh, Kw, stride, Cinp, KKC, sub, b_tile,
                      activation):
    # idx_ref:   (N_pad,)  int32 in SMEM (scalar prefetch) -- per-sample class
    # x_ref:     (b_tile, Cinp, Hp*Wp + Kw - 1)  flattened, padded samples
    # w_ref:     (n_class, Cout, KKC + sub)      all class weights (+bias col)
    # o_ref:     (b_tile, Cout, Ho*Wp)           lane-dense per-sample output
    # patch_ref: (KKC + sub, Ho*Wp)              im2col scratch (VMEM)
    L = Ho * Wp

    # Bias fold: a full sublane-pack block whose first row is ones (rest zero).
    # Written every step (cheap) so it is valid on every core even when the
    # "parallel" batch axis is sharded across TensorCores.
    row = jax.lax.broadcasted_iota(jnp.int32, (sub, L), 0)
    patch_ref[pl.ds(KKC, sub), :] = (row == 0).astype(patch_ref.dtype)

    g = pl.program_id(0)
    for b in range(b_tile):
        # ---- relayout-light im2col: every tap row-block is tile-aligned ----
        if stride == 1:
            # Each tap (kh, kw) is ONE contiguous lane slice covering all rows.
            for kh in range(Kh):
                for kw in range(Kw):
                    t = kh * Kw + kw
                    patch_ref[pl.ds(t * Cinp, Cinp), :] = \
                        x_ref[b, :, pl.ds(kh * Wp + kw, L)]
        else:
            # Strided rows: gather only the Ho needed rows; the column ::stride
            # subsampling is a cheap slice in the wrapper.
            for kh in range(Kh):
                for kw in range(Kw):
                    t = kh * Kw + kw
                    for ho in range(Ho):
                        patch_ref[pl.ds(t * Cinp, Cinp), pl.ds(ho * Wp, Wp)] = \
                            x_ref[b, :, pl.ds((kh + ho * stride) * Wp + kw, Wp)]

        # ---- per-sample class weights (all classes resident in VMEM) ----
        idx = idx_ref[g * b_tile + b]
        w = w_ref[idx]                                  # (Cout, KKC + sub)

        # ---- single MXU contraction, f32 accumulate; bias already folded ----
        acc = jnp.dot(w, patch_ref[...], preferred_element_type=jnp.float32)

        if activation == 'relu':
            acc = jnp.maximum(acc, 0.0)
        elif activation == 'swish':
            acc = acc * jax.nn.sigmoid(acc)

        o_ref[b] = acc.astype(o_ref.dtype)


def cond_conv(x_nchw, weights, bias, decoder_idx, *, stride=1, padding=None,
              activation='swish', compute_dtype=jnp.bfloat16, out_dtype=None,
              b_tile=None):
    """weights: (n_class, Cout, Cin, Kh, Kw); bias: (n_class, Cout, 1, 1)."""
    N, Cin, Hi, Wi = x_nchw.shape
    n_class, Cout, Cin_w, Kh, Kw = weights.shape
    assert Cin == Cin_w
    out_dtype = x_nchw.dtype if out_dtype is None else out_dtype

    pad = padding if padding is not None else Kh // 2
    Hp, Wp = Hi + 2 * pad, Wi + 2 * pad
    Ho = (Hp - Kh) // stride + 1
    Wo = (Wp - Kw) // stride + 1
    L = Ho * Wp                          # lane-dense per-sample output length
    Lx = Hp * Wp + Kw - 1                # flattened + tail-padded input length

    # Sublane pack for compute_dtype: 8 rows (f32), 16 rows (bf16).
    sub = max(8, 32 // jnp.dtype(compute_dtype).itemsize)
    Cinp = ((Cin + sub - 1) // sub) * sub
    KKC = Kh * Kw * Cinp
    Ktot = KKC + sub                     # + ones-row block for the bias fold

    # ---- batch tile under a VMEM budget (comfortable on v7x's 64 MiB) ----
    in_b = jnp.dtype(compute_dtype).itemsize
    out_b = jnp.dtype(out_dtype).itemsize
    fixed = 2 * n_class * Cout * Ktot * in_b + Ktot * L * in_b
    per_s = 2 * (Cinp * Lx * in_b + Cout * L * out_b)
    budget = 40 * 2**20
    if b_tile is None:
        b_tile = max(1, min(N, 8, (budget - fixed) // max(per_s, 1)))
    b_tile = int(max(1, min(b_tile, N)))
    N_pad = ((N + b_tile - 1) // b_tile) * b_tile
    n_blocks = N_pad // b_tile

    vmem_limit = int(min(64 * 2**20, max(32 * 2**20, 2 * (fixed + b_tile * per_s))))

    # --- glue: padding + flattening only (NCHW stays NCHW, no transposes) ---
    x_pad = jnp.pad(x_nchw, ((0, 0), (0, 0), (pad, pad), (pad, pad)))
    x_flat = x_pad.reshape(N, Cin, Hp * Wp)
    x_flat = jnp.pad(x_flat, ((0, N_pad - N), (0, Cinp - Cin), (0, Lx - Hp * Wp)))
    x_flat = x_flat.astype(compute_dtype)

    # weights -> (n_class, Cout, Kh*Kw*Cinp [+ bias col + zero pad]); tap-major,
    # channel-minor, channels zero-padded exactly like x_flat.
    w5 = jnp.pad(weights, ((0, 0), (0, 0), (0, Cinp - Cin), (0, 0), (0, 0)))
    w_mat = jnp.transpose(w5, (0, 1, 3, 4, 2)).reshape(n_class, Cout, KKC)
    b_col = bias.reshape(n_class, Cout, 1)
    w_mat = jnp.concatenate(
        [w_mat, b_col, jnp.zeros((n_class, Cout, sub - 1), w_mat.dtype)],
        axis=-1).astype(compute_dtype)

    # Clamp class indices (an OOB index would otherwise be an unchecked read).
    idx = jnp.clip(decoder_idx.astype(jnp.int32), 0, n_class - 1)
    idx_pad = jnp.pad(idx, ((0, N_pad - N),))

    kernel = functools.partial(
        _cond_conv_kernel, Wp=Wp, Ho=Ho, Kh=Kh, Kw=Kw, stride=stride,
        Cinp=Cinp, KKC=KKC, sub=sub, b_tile=b_tile, activation=activation)

    out_flat = pl.pallas_call(
        kernel,
        out_shape=jax.ShapeDtypeStruct((N_pad, Cout, L), out_dtype),
        grid_spec=pltpu.PrefetchScalarGridSpec(
            num_scalar_prefetch=1,
            grid=(n_blocks,),
            in_specs=[
                pl.BlockSpec((b_tile, Cinp, Lx), lambda g, idx_ref: (g, 0, 0)),
                # constant block index -> weights are DMA'd once for the grid
                pl.BlockSpec((n_class, Cout, Ktot), lambda g, idx_ref: (0, 0, 0)),
            ],
            out_specs=pl.BlockSpec((b_tile, Cout, L), lambda g, idx_ref: (g, 0, 0)),
            scratch_shapes=[pltpu.VMEM((Ktot, L), compute_dtype)],
        ),
        compiler_params=pltpu.CompilerParams(
            dimension_semantics=("parallel",),
            vmem_limit_bytes=vmem_limit),
    )(idx_pad, x_flat, w_mat)

    # Un-flatten: rows are already stride-subsampled in the kernel; columns
    # >= Wo*stride are wrap-around junk and the column stride is a free slice.
    out = out_flat[:N].reshape(N, Cout, Ho, Wp)
    out = out[:, :, :, ::stride][:, :, :, :Wo]
    return out                           # NCHW


def _reference(x, weights, bias, decoder_idx, stride, pad, activation):
    """Pure-JAX reference matching the PyTorch forward (NCHW, f32)."""
    N = x.shape[0]
    outs = []
    for n in range(N):
        w = weights[decoder_idx[n]]
        o = jax.lax.conv_general_dilated(
            x[n:n + 1], w, window_strides=(stride, stride),
            padding=[(pad, pad), (pad, pad)],
            dimension_numbers=('NCHW', 'OIHW', 'NCHW'))
        outs.append(o)
    o = jnp.concatenate(outs, axis=0)
    o = o + bias[decoder_idx]            # (N, Cout, 1, 1) broadcast
    if activation == 'relu':
        o = jnp.maximum(o, 0.0)
    elif activation == 'swish':
        o = o * jax.nn.sigmoid(o)
    return o


if __name__ == "__main__":
    # Small shapes consistent with the module's forward.
    N, Cin, H, W = 2, 4, 16, 16
    n_class, Cout, K = 3, 8, 3

    key = jax.random.PRNGKey(0)
    k1, k2, k3, k4, k5, k6 = jax.random.split(key, 6)

    # Deterministic init mirroring kaiming_uniform_(a=sqrt(5)) + bias bound.
    fan_in = Cin * K * K
    bound = 1.0 / math.sqrt(fan_in)
    weights = jax.random.uniform(k1, (n_class, Cout, Cin, K, K),
                                 jnp.float32, -bound, bound)
    bias = jax.random.uniform(k2, (n_class, Cout, 1, 1),
                              jnp.float32, -bound, bound)
    x = jax.random.normal(k3, (N, Cin, H, W), jnp.float32)
    decoder_idx = jax.random.randint(k4, (N,), 0, n_class)

    # 1) stride=1, f32 compute path: tight structural check.
    out_f32 = jax.block_until_ready(
        cond_conv(x, weights, bias, decoder_idx, stride=1,
                  activation='swish', compute_dtype=jnp.float32))
    ref = _reference(x, weights, bias, decoder_idx, 1, K // 2, 'swish')
    assert out_f32.shape == ref.shape == (N, Cout, H, W), (out_f32.shape, ref.shape)
    assert jnp.allclose(out_f32, ref, atol=1e-3, rtol=1e-3), \
        float(jnp.max(jnp.abs(out_f32 - ref)))

    # 2) stride=1, bf16 fast path (default): relaxed tolerance vs f32 reference.
    out_bf16 = jax.block_until_ready(
        cond_conv(x, weights, bias, decoder_idx, stride=1, activation='swish'))
    assert jnp.allclose(out_bf16.astype(jnp.float32), ref, atol=3e-2, rtol=3e-2), \
        float(jnp.max(jnp.abs(out_bf16.astype(jnp.float32) - ref)))

    # 3) stride=2 (in-kernel row subsampling), f32 compute.
    out_s2 = jax.block_until_ready(
        cond_conv(x, weights, bias, decoder_idx, stride=2,
                  activation='swish', compute_dtype=jnp.float32))
    ref_s2 = _reference(x, weights, bias, decoder_idx, 2, K // 2, 'swish')
    assert out_s2.shape == ref_s2.shape, (out_s2.shape, ref_s2.shape)
    assert jnp.allclose(out_s2, ref_s2, atol=1e-3, rtol=1e-3), \
        float(jnp.max(jnp.abs(out_s2 - ref_s2)))

    # 4) ragged batch (N=5) with b_tile=2: exercises batch padding, multiple
    #    grid steps and mixed classes within a block.
    N2 = 5
    x2 = jax.random.normal(k5, (N2, Cin, H, W), jnp.float32)
    idx2 = jax.random.randint(k6, (N2,), 0, n_class)
    out_r = jax.block_until_ready(
        cond_conv(x2, weights, bias, idx2, stride=1, activation='swish',
                  compute_dtype=jnp.float32, b_tile=2))
    ref_r = _reference(x2, weights, bias, idx2, 1, K // 2, 'swish')
    assert out_r.shape == ref_r.shape, (out_r.shape, ref_r.shape)
    assert jnp.allclose(out_r, ref_r, atol=1e-3, rtol=1e-3), \
        float(jnp.max(jnp.abs(out_r - ref_r)))

    print("KERNEL_OK")
</pallas_src>

<mosaic_0001>
module attributes {stable_mosaic.version = 11 : i64} {
  func.func @_cond_conv_kernel(%arg0: i32, %arg1: memref<2xi32, #tpu.memory_space<smem>>, %arg2: memref<2x8x326xf32, #tpu.memory_space<vmem>>, %arg3: memref<3x8x80xf32, #tpu.memory_space<vmem>>, %arg4: memref<2x8x288xf32, #tpu.memory_space<vmem>>, %arg5: memref<80x288xf32, #tpu.memory_space<vmem>>) attributes {dimension_semantics = [#tpu.dimension_semantics<parallel>], iteration_bounds = array<i64: 1>, scalar_prefetch = 1 : i64, scratch_operands = 1 : i64, tpu.core_type = #tpu.core_type<tc>, window_params = [{transform_indices = @transform_0, window_bounds = array<i64: 2, 8, 326>}, {pipeline_mode = #tpu.pipeline_mode<synchronous>, transform_indices = @transform_1, window_bounds = array<i64: 3, 8, 80>}, {transform_indices = @transform_2, window_bounds = array<i64: 2, 8, 288>}]} {
    %0 = tpu.iota {dimensions = array<i32: 0>} : vector<8x288xi32>
    %c0_i32 = arith.constant 0 : i32
    %1 = vector.broadcast %c0_i32 : i32 to vector<8x288xi32>
    %2 = arith.cmpi eq, %0, %1 : vector<8x288xi32>
    %3 = arith.extui %2 : vector<8x288xi1> to vector<8x288xi32>
    %4 = arith.sitofp %3 : vector<8x288xi32> to vector<8x288xf32>
    %c72 = arith.constant 72 : index
    %c0 = arith.constant 0 : index
    %5 = vector.load %arg5[%c72, %c0] : memref<80x288xf32, #tpu.memory_space<vmem>>, vector<8x288xf32>
    tpu.vector_store %arg5[%c72, %c0], %4 {strides = array<i32>} : memref<80x288xf32, #tpu.memory_space<vmem>>, vector<8x288xf32>,
    %c0_0 = arith.constant 0 : index
    %c0_1 = arith.constant 0 : index
    %c0_2 = arith.constant 0 : index
    %6 = vector.load %arg2[%c0_0, %c0_1, %c0_2] : memref<2x8x326xf32, #tpu.memory_space<vmem>>, vector<1x8x288xf32>
    %7 = vector.shape_cast %6 : vector<1x8x288xf32> to vector<8x288xf32>
    %c0_3 = arith.constant 0 : index
    %c0_4 = arith.constant 0 : index
    %8 = vector.load %arg5[%c0_3, %c0_4] : memref<80x288xf32, #tpu.memory_space<vmem>>, vector<8x288xf32>
    tpu.vector_store %arg5[%c0_3, %c0_4], %7 {strides = array<i32>} : memref<80x288xf32, #tpu.memory_space<vmem>>, vector<8x288xf32>,
    %c0_5 = arith.constant 0 : index
    %c0_6 = arith.constant 0 : index
    %c1 = arith.constant 1 : index
    %9 = vector.load %arg2[%c0_5, %c0_6, %c1] : memref<2x8x326xf32, #tpu.memory_space<vmem>>, vector<1x8x288xf32>
    %10 = vector.shape_cast %9 : vector<1x8x288xf32> to vector<8x288xf32>
    %c8 = arith.constant 8 : index
    %c0_7 = arith.constant 0 : index
    %11 = vector.load %arg5[%c8, %c0_7] : memref<80x288xf32, #tpu.memory_space<vmem>>, vector<8x288xf32>
    tpu.vector_store %arg5[%c8, %c0_7], %10 {strides = array<i32>} : memref<80x288xf32, #tpu.memory_space<vmem>>, vector<8x288xf32>,
    %c0_8 = arith.constant 0 : index
    %c0_9 = arith.constant 0 : index
    %c2 = arith.constant 2 : index
    %12 = vector.load %arg2[%c0_8, %c0_9, %c2] : memref<2x8x326xf32, #tpu.memory_space<vmem>>, vector<1x8x288xf32>
    %13 = vector.shape_cast %12 : vector<1x8x288xf32> to vector<8x288xf32>
    %c16 = arith.constant 16 : index
    %c0_10 = arith.constant 0 : index
    %14 = vector.load %arg5[%c16, %c0_10] : memref<80x288xf32, #tpu.memory_space<vmem>>, vector<8x288xf32>
    tpu.vector_store %arg5[%c16, %c0_10], %13 {strides = array<i32>} : memref<80x288xf32, #tpu.memory_space<vmem>>, vector<8x288xf32>,
    %c0_11 = arith.constant 0 : index
    %c0_12 = arith.constant 0 : index
    %c18 = arith.constant 18 : index
    %15 = vector.load %arg2[%c0_11, %c0_12, %c18] : memref<2x8x326xf32, #tpu.memory_space<vmem>>, vector<1x8x288xf32>
    %16 = vector.shape_cast %15 : vector<1x8x288xf32> to vector<8x288xf32>
    %c24 = arith.constant 24 : index
    %c0_13 = arith.constant 0 : index
    %17 = vector.load %arg5[%c24, %c0_13] : memref<80x288xf32, #tpu.memory_space<vmem>>, vector<8x288xf32>
    tpu.vector_store %arg5[%c24, %c0_13], %16 {strides = array<i32>} : memref<80x288xf32, #tpu.memory_space<vmem>>, vector<8x288xf32>,
    %c0_14 = arith.constant 0 : index
    %c0_15 = arith.constant 0 : index
    %c19 = arith.constant 19 : index
    %18 = vector.load %arg2[%c0_14, %c0_15, %c19] : memref<2x8x326xf32, #tpu.memory_space<vmem>>, vector<1x8x288xf32>
    %19 = vector.shape_cast %18 : vector<1x8x288xf32> to vector<8x288xf32>
    %c32 = arith.constant 32 : index
    %c0_16 = arith.constant 0 : index
    %20 = vector.load %arg5[%c32, %c0_16] : memref<80x288xf32, #tpu.memory_space<vmem>>, vector<8x288xf32>
    tpu.vector_store %arg5[%c32, %c0_16], %19 {strides = array<i32>} : memref<80x288xf32, #tpu.memory_space<vmem>>, vector<8x288xf32>,
    %c0_17 = arith.constant 0 : index
    %c0_18 = arith.constant 0 : index
    %c20 = arith.constant 20 : index
    %21 = vector.load %arg2[%c0_17, %c0_18, %c20] : memref<2x8x326xf32, #tpu.memory_space<vmem>>, vector<1x8x288xf32>
    %22 = vector.shape_cast %21 : vector<1x8x288xf32> to vector<8x288xf32>
    %c40 = arith.constant 40 : index
    %c0_19 = arith.constant 0 : index
    %23 = vector.load %arg5[%c40, %c0_19] : memref<80x288xf32, #tpu.memory_space<vmem>>, vector<8x288xf32>
    tpu.vector_store %arg5[%c40, %c0_19], %22 {strides = array<i32>} : memref<80x288xf32, #tpu.memory_space<vmem>>, vector<8x288xf32>,
    %c0_20 = arith.constant 0 : index
    %c0_21 = arith.constant 0 : index
    %c36 = arith.constant 36 : index
    %24 = vector.load %arg2[%c0_20, %c0_21, %c36] : memref<2x8x326xf32, #tpu.memory_space<vmem>>, vector<1x8x288xf32>
    %25 = vector.shape_cast %24 : vector<1x8x288xf32> to vector<8x288xf32>
    %c48 = arith.constant 48 : index
    %c0_22 = arith.constant 0 : index
    %26 = vector.load %arg5[%c48, %c0_22] : memref<80x288xf32, #tpu.memory_space<vmem>>, vector<8x288xf32>
    tpu.vector_store %arg5[%c48, %c0_22], %25 {strides = array<i32>} : memref<80x288xf32, #tpu.memory_space<vmem>>, vector<8x288xf32>,
    %c0_23 = arith.constant 0 : index
    %c0_24 = arith.constant 0 : index
    %c37 = arith.constant 37 : index
    %27 = vector.load %arg2[%c0_23, %c0_24, %c37] : memref<2x8x326xf32, #tpu.memory_space<vmem>>, vector<1x8x288xf32>
    %28 = vector.shape_cast %27 : vector<1x8x288xf32> to vector<8x288xf32>
    %c56 = arith.constant 56 : index
    %c0_25 = arith.constant 0 : index
    %29 = vector.load %arg5[%c56, %c0_25] : memref<80x288xf32, #tpu.memory_space<vmem>>, vector<8x288xf32>
    tpu.vector_store %arg5[%c56, %c0_25], %28 {strides = array<i32>} : memref<80x288xf32, #tpu.memory_space<vmem>>, vector<8x288xf32>,
    %c0_26 = arith.constant 0 : index
    %c0_27 = arith.constant 0 : index
    %c38 = arith.constant 38 : index
    %30 = vector.load %arg2[%c0_26, %c0_27, %c38] : memref<2x8x326xf32, #tpu.memory_space<vmem>>, vector<1x8x288xf32>
    %31 = vector.shape_cast %30 : vector<1x8x288xf32> to vector<8x288xf32>
    %c64 = arith.constant 64 : index
    %c0_28 = arith.constant 0 : index
    %32 = vector.load %arg5[%c64, %c0_28] : memref<80x288xf32, #tpu.memory_space<vmem>>, vector<8x288xf32>
    tpu.vector_store %arg5[%c64, %c0_28], %31 {strides = array<i32>} : memref<80x288xf32, #tpu.memory_space<vmem>>, vector<8x288xf32>,
    %c2_i32 = arith.constant 2 : i32
    %33 = arith.muli %arg0, %c2_i32 : i32
    %c0_i32_29 = arith.constant 0 : i32
    %34 = arith.addi %33, %c0_i32_29 : i32
    %35 = arith.index_cast %34 : i32 to index
    %36 = memref.load %arg1[%35] : memref<2xi32, #tpu.memory_space<smem>>
    %37 = arith.index_cast %36 : i32 to index
    %c0_30 = arith.constant 0 : index
    %c0_31 = arith.constant 0 : index
    %38 = vector.load %arg3[%37, %c0_30, %c0_31] : memref<3x8x80xf32, #tpu.memory_space<vmem>>, vector<1x8x80xf32>
    %39 = vector.shape_cast %38 : vector<1x8x80xf32> to vector<8x80xf32>
    %c0_32 = arith.constant 0 : index
    %c0_33 = arith.constant 0 : index
    %40 = vector.load %arg5[%c0_32, %c0_33] : memref<80x288xf32, #tpu.memory_space<vmem>>, vector<80x288xf32>
    %cst = arith.constant dense<0.000000e+00> : vector<8x288xf32>
    %41 = tpu.matmul %39, %40, %cst {dimension_numbers = #tpu.dot_dimension_numbers<[1], [0], [0], [1], [0, 0, 1, 1], [], []>} : vector<8x80xf32>, vector<80x288xf32>, vector<8x288xf32> -> vector<8x288xf32>
    %42 = arith.negf %41 : vector<8x288xf32>
    %43 = math.exp %42 : vector<8x288xf32>
    %cst_34 = arith.constant 1.000000e+00 : f32
    %44 = vector.broadcast %cst_34 : f32 to vector<8x288xf32>
    %45 = arith.addf %44, %43 : vector<8x288xf32>
    %46 = arith.divf %44, %45 : vector<8x288xf32>
    %47 = arith.mulf %41, %46 : vector<8x288xf32>
    %c0_35 = arith.constant 0 : index
    %c0_36 = arith.constant 0 : index
    %c0_37 = arith.constant 0 : index
    %48 = vector.load %arg4[%c0_35, %c0_36, %c0_37] : memref<2x8x288xf32, #tpu.memory_space<vmem>>, vector<1x8x288xf32>
    %49 = vector.shape_cast %48 : vector<1x8x288xf32> to vector<8x288xf32>
    %50 = vector.shape_cast %47 : vector<8x288xf32> to vector<1x8x288xf32>
    tpu.vector_store %arg4[%c0_35, %c0_36, %c0_37], %50 {strides = array<i32>} : memref<2x8x288xf32, #tpu.memory_space<vmem>>, vector<1x8x288xf32>,
    %c1_38 = arith.constant 1 : index
    %c0_39 = arith.constant 0 : index
    %c0_40 = arith.constant 0 : index
    %51 = vector.load %arg2[%c1_38, %c0_39, %c0_40] : memref<2x8x326xf32, #tpu.memory_space<vmem>>, vector<1x8x288xf32>
    %52 = vector.shape_cast %51 : vector<1x8x288xf32> to vector<8x288xf32>
    %c0_41 = arith.constant 0 : index
    %c0_42 = arith.constant 0 : index
    %53 = vector.load %arg5[%c0_41, %c0_42] : memref<80x288xf32, #tpu.memory_space<vmem>>, vector<8x288xf32>
    tpu.vector_store %arg5[%c0_41, %c0_42], %52 {strides = array<i32>} : memref<80x288xf32, #tpu.memory_space<vmem>>, vector<8x288xf32>,
    %c1_43 = arith.constant 1 : index
    %c0_44 = arith.constant 0 : index
    %c1_45 = arith.constant 1 : index
    %54 = vector.load %arg2[%c1_43, %c0_44, %c1_45] : memref<2x8x326xf32, #tpu.memory_space<vmem>>, vector<1x8x288xf32>
    %55 = vector.shape_cast %54 : vector<1x8x288xf32> to vector<8x288xf32>
    %c8_46 = arith.constant 8 : index
    %c0_47 = arith.constant 0 : index
    %56 = vector.load %arg5[%c8_46, %c0_47] : memref<80x288xf32, #tpu.memory_space<vmem>>, vector<8x288xf32>
    tpu.vector_store %arg5[%c8_46, %c0_47], %55 {strides = array<i32>} : memref<80x288xf32, #tpu.memory_space<vmem>>, vector<8x288xf32>,
    %c1_48 = arith.constant 1 : index
    %c0_49 = arith.constant 0 : index
    %c2_50 = arith.constant 2 : index
    %57 = vector.load %arg2[%c1_48, %c0_49, %c2_50] : memref<2x8x326xf32, #tpu.memory_space<vmem>>, vector<1x8x288xf32>
    %58 = vector.shape_cast %57 : vector<1x8x288xf32> to vector<8x288xf32>
    %c16_51 = arith.constant 16 : index
    %c0_52 = arith.constant 0 : index
    %59 = vector.load %arg5[%c16_51, %c0_52] : memref<80x288xf32, #tpu.memory_space<vmem>>, vector<8x288xf32>
    tpu.vector_store %arg5[%c16_51, %c0_52], %58 {strides = array<i32>} : memref<80x288xf32, #tpu.memory_space<vmem>>, vector<8x288xf32>,
    %c1_53 = arith.constant 1 : index
    %c0_54 = arith.constant 0 : index
    %c18_55 = arith.constant 18 : index
    %60 = vector.load %arg2[%c1_53, %c0_54, %c18_55] : memref<2x8x326xf32, #tpu.memory_space<vmem>>, vector<1x8x288xf32>
    %61 = vector.shape_cast %60 : vector<1x8x288xf32> to vector<8x288xf32>
    %c24_56 = arith.constant 24 : index
    %c0_57 = arith.constant 0 : index
    %62 = vector.load %arg5[%c24_56, %c0_57] : memref<80x288xf32, #tpu.memory_space<vmem>>, vector<8x288xf32>
    tpu.vector_store %arg5[%c24_56, %c0_57], %61 {strides = array<i32>} : memref<80x288xf32, #tpu.memory_space<vmem>>, vector<8x288xf32>,
    %c1_58 = arith.constant 1 : index
    %c0_59 = arith.constant 0 : index
    %c19_60 = arith.constant 19 : index
    %63 = vector.load %arg2[%c1_58, %c0_59, %c19_60] : memref<2x8x326xf32, #tpu.memory_space<vmem>>, vector<1x8x288xf32>
    %64 = vector.shape_cast %63 : vector<1x8x288xf32> to vector<8x288xf32>
    %c32_61 = arith.constant 32 : index
    %c0_62 = arith.constant 0 : index
    %65 = vector.load %arg5[%c32_61, %c0_62] : memref<80x288xf32, #tpu.memory_space<vmem>>, vector<8x288xf32>
    tpu.vector_store %arg5[%c32_61, %c0_62], %64 {strides = array<i32>} : memref<80x288xf32, #tpu.memory_space<vmem>>, vector<8x288xf32>,
    %c1_63 = arith.constant 1 : index
    %c0_64 = arith.constant 0 : index
    %c20_65 = arith.constant 20 : index
    %66 = vector.load %arg2[%c1_63, %c0_64, %c20_65] : memref<2x8x326xf32, #tpu.memory_space<vmem>>, vector<1x8x288xf32>
    %67 = vector.shape_cast %66 : vector<1x8x288xf32> to vector<8x288xf32>
    %c40_66 = arith.constant 40 : index
    %c0_67 = arith.constant 0 : index
    %68 = vector.load %arg5[%c40_66, %c0_67] : memref<80x288xf32, #tpu.memory_space<vmem>>, vector<8x288xf32>
    tpu.vector_store %arg5[%c40_66, %c0_67], %67 {strides = array<i32>} : memref<80x288xf32, #tpu.memory_space<vmem>>, vector<8x288xf32>,
    %c1_68 = arith.constant 1 : index
    %c0_69 = arith.constant 0 : index
    %c36_70 = arith.constant 36 : index
    %69 = vector.load %arg2[%c1_68, %c0_69, %c36_70] : memref<2x8x326xf32, #tpu.memory_space<vmem>>, vector<1x8x288xf32>
    %70 = vector.shape_cast %69 : vector<1x8x288xf32> to vector<8x288xf32>
    %c48_71 = arith.constant 48 : index
    %c0_72 = arith.constant 0 : index
    %71 = vector.load %arg5[%c48_71, %c0_72] : memref<80x288xf32, #tpu.memory_space<vmem>>, vector<8x288xf32>
    tpu.vector_store %arg5[%c48_71, %c0_72], %70 {strides = array<i32>} : memref<80x288xf32, #tpu.memory_space<vmem>>, vector<8x288xf32>,
    %c1_73 = arith.constant 1 : index
    %c0_74 = arith.constant 0 : index
    %c37_75 = arith.constant 37 : index
    %72 = vector.load %arg2[%c1_73, %c0_74, %c37_75] : memref<2x8x326xf32, #tpu.memory_space<vmem>>, vector<1x8x288xf32>
    %73 = vector.shape_cast %72 : vector<1x8x288xf32> to vector<8x288xf32>
    %c56_76 = arith.constant 56 : index
    %c0_77 = arith.constant 0 : index
    %74 = vector.load %arg5[%c56_76, %c0_77] : memref<80x288xf32, #tpu.memory_space<vmem>>, vector<8x288xf32>
    tpu.vector_store %arg5[%c56_76, %c0_77], %73 {strides = array<i32>} : memref<80x288xf32, #tpu.memory_space<vmem>>, vector<8x288xf32>,
    %c1_78 = arith.constant 1 : index
    %c0_79 = arith.constant 0 : index
    %c38_80 = arith.constant 38 : index
    %75 = vector.load %arg2[%c1_78, %c0_79, %c38_80] : memref<2x8x326xf32, #tpu.memory_space<vmem>>, vector<1x8x288xf32>
    %76 = vector.shape_cast %75 : vector<1x8x288xf32> to vector<8x288xf32>
    %c64_81 = arith.constant 64 : index
    %c0_82 = arith.constant 0 : index
    %77 = vector.load %arg5[%c64_81, %c0_82] : memref<80x288xf32, #tpu.memory_space<vmem>>, vector<8x288xf32>
    tpu.vector_store %arg5[%c64_81, %c0_82], %76 {strides = array<i32>} : memref<80x288xf32, #tpu.memory_space<vmem>>, vector<8x288xf32>,
    %c2_i32_83 = arith.constant 2 : i32
    %78 = arith.muli %arg0, %c2_i32_83 : i32
    %c1_i32 = arith.constant 1 : i32
    %79 = arith.addi %78, %c1_i32 : i32
    %80 = arith.index_cast %79 : i32 to index
    %81 = memref.load %arg1[%80] : memref<2xi32, #tpu.memory_space<smem>>
    %82 = arith.index_cast %81 : i32 to index
    %c0_84 = arith.constant 0 : index
    %c0_85 = arith.constant 0 : index
    %83 = vector.load %arg3[%82, %c0_84, %c0_85] : memref<3x8x80xf32, #tpu.memory_space<vmem>>, vector<1x8x80xf32>
    %84 = vector.shape_cast %83 : vector<1x8x80xf32> to vector<8x80xf32>
    %c0_86 = arith.constant 0 : index
    %c0_87 = arith.constant 0 : index
    %85 = vector.load %arg5[%c0_86, %c0_87] : memref<80x288xf32, #tpu.memory_space<vmem>>, vector<80x288xf32>
    %cst_88 = arith.constant dense<0.000000e+00> : vector<8x288xf32>
    %86 = tpu.matmul %84, %85, %cst_88 {dimension_numbers = #tpu.dot_dimension_numbers<[1], [0], [0], [1], [0, 0, 1, 1], [], []>} : vector<8x80xf32>, vector<80x288xf32>, vector<8x288xf32> -> vector<8x288xf32>
    %87 = arith.negf %86 : vector<8x288xf32>
    %88 = math.exp %87 : vector<8x288xf32>
    %cst_89 = arith.constant 1.000000e+00 : f32
    %89 = vector.broadcast %cst_89 : f32 to vector<8x288xf32>
    %90 = arith.addf %89, %88 : vector<8x288xf32>
    %91 = arith.divf %89, %90 : vector<8x288xf32>
    %92 = arith.mulf %86, %91 : vector<8x288xf32>
    %c1_90 = arith.constant 1 : index
    %c0_91 = arith.constant 0 : index
    %c0_92 = arith.constant 0 : index
    %93 = vector.load %arg4[%c1_90, %c0_91, %c0_92] : memref<2x8x288xf32, #tpu.memory_space<vmem>>, vector<1x8x288xf32>
    %94 = vector.shape_cast %93 : vector<1x8x288xf32> to vector<8x288xf32>
    %95 = vector.shape_cast %92 : vector<8x288xf32> to vector<1x8x288xf32>
    tpu.vector_store %arg4[%c1_90, %c0_91, %c0_92], %95 {strides = array<i32>} : memref<2x8x288xf32, #tpu.memory_space<vmem>>, vector<1x8x288xf32>,
    return
  }
  func.func @transform_0(%arg0: i32, %arg1: memref<2xi32, #tpu.memory_space<smem>>) -> (i32, i32, i32) {
    %c0_i32 = arith.constant 0 : i32
    %c0_i32_0 = arith.constant 0 : i32
    %c0_i32_1 = arith.constant 0 : i32
    return %arg0, %c0_i32, %c0_i32_0 : i32, i32, i32
  }
  func.func @transform_1(%arg0: i32, %arg1: memref<2xi32, #tpu.memory_space<smem>>) -> (i32, i32, i32) {
    %c0_i32 = arith.constant 0 : i32
    %c0_i32_0 = arith.constant 0 : i32
    %c0_i32_1 = arith.constant 0 : i32
    %c0_i32_2 = arith.constant 0 : i32
    return %c0_i32, %c0_i32_0, %c0_i32_1 : i32, i32, i32
  }
  func.func @transform_2(%arg0: i32, %arg1: memref<2xi32, #tpu.memory_space<smem>>) -> (i32, i32, i32) {
    %c0_i32 = arith.constant 0 : i32
    %c0_i32_0 = arith.constant 0 : i32
    %c0_i32_1 = arith.constant 0 : i32
    return %arg0, %c0_i32, %c0_i32_0 : i32, i32, i32
  }
}

</mosaic_0001>

<bundles_post_ra>
// kernel: tpu_custom_call.1
= control target key start
LH: loop header
LB: loop body
LE: loop exit
PB: predicated region body
PF: predicated region fallthrough
CT: control target
= control target key end

     0   :  { %s1029_s12 = smov [#allocation4]   ;;  %s1289_s0 = inlined_call_operand.hbm [shape: s32[2], index: 0, kind: input, shape index: {}]   ;;  %s1290_s1 = inlined_call_operand.hbm [shape: f32[2,8,326], index: 1, kind: input, shape index: {}]   ;;  %s1291_s2 = inlined_call_operand.hbm [shape: f32[3,8,80], index: 2, kind: input, shape index: {}]   ;;  %s1292_s3 = inlined_call_operand.hbm [shape: f32[2,8,288], index: 3, kind: output, shape index: {}]  }
   0x1   :  { %9 = dma.hbm_to_smem %s1289_s0, 16, %s1029_s12, [#allocation3] }
   0x2   :  { %1021 = dma.done.wait [#allocation3], 16 }
   0x3   :  { %1022 = vsyncadd [#allocation3], 4294967280 }
   0x4   :  { %11 = sfence }
   0x5   :  { %12 = vsyncpa [#allocation6], 0 }
   0x6   :  { %13 = vsyncpa [#allocation9], 0 }
   0x7   :  { %14 = vsyncpa [#allocation7], 0  ;;  %s1030_s15 = smov [#allocation5]  }
   0x8   :  { %s20_s16 = sshll.u32 %s1030_s15, 4  ;;  %s21_s16 = int_to_ptr.vmem [resolvable:$true] %s20_s16 }
   0x9   :  { %s969_s17 = scalar_lea.vmem %s21_s16, 768  ;;  %p974_p1 = scmp.lt.s32.totalorder %s21_s16, %s21_s16 }
   0xa   :  { %p970_p0 = scmp.ne.s32.totalorder %s21_s16, %s969_s17  ;;  %p975_p2 = scmp.lt.s32.totalorder %s969_s17, %s969_s17 }
   0xc   :  { %p976_p3 = por %p975_p2, %p974_p1 }
   0xe   :  { %p977_p4 = pnand %p976_p3, %p970_p0 }
  0x10   :  { %980 = shalt.err (!%p977_p4)
}
  0x11   :  { %s1031_s18 = smov 384   ;;  %s1032_s19 = smov 24  }
  0x12   :  { %26 = dma.hbm_to_vmem [thread:$0]  %s1290_s1, 768, %s21_s16, [#allocation6], %s1031_s18, %s1031_s18, %s1032_s19  }
  0x13   :  { %s1033_s21 = smov [#allocation8]  }
  0x14   :  { %s32_s22 = sshll.u32 %s1033_s21, 4  ;;  %s33_s22 = int_to_ptr.vmem [resolvable:$true] %s32_s22 }
  0x15   :  { %s989_s23 = scalar_lea.vmem %s33_s22, 384  ;;  %p994_p6 = scmp.lt.s32.totalorder %s33_s22, %s33_s22 }
  0x16   :  { %p990_p5 = scmp.ne.s32.totalorder %s33_s22, %s989_s23  ;;  %p995_p7 = scmp.lt.s32.totalorder %s989_s23, %s989_s23 }
  0x18   :  { %p996_p8 = por %p995_p7, %p994_p6 }
  0x1a   :  { %p997_p9 = pnand %p996_p8, %p990_p5 }
  0x1c   :  { %1000 = shalt.err (!%p997_p9)
}
  0x1d   :  { %s1034_s24 = smov 128   ;;  %s1035_s25 = smov 8  }
  0x1e   :  { %38 = dma.hbm_to_vmem [thread:$0]  %s1291_s2, 384, %s33_s22, [#allocation9], %s1034_s24, %s1034_s24, %s1035_s25  }
  0x1f   :  { %1023 = dma.done.wait [#allocation6], 768  }
  0x20   :  { %1024 = vsyncadd [#allocation6], 4294966528 }
  0x21   :  { %1025 = dma.done.wait [#allocation9], 384  }
  0x22   :  { %1026 = vsyncadd [#allocation9], 4294966912  ;;  %v45_v0 = vlaneseq  ;;  %v1036_v1 = vmov 0.0   ;;  %vm52_vm0 = vcmask 261120   ;;  %v1037_v4 = vmov 1.0   ;;  %v1092_v5 = vld [vmem:[#allocation5 + $0x8] sm:$0xff] }
  0x23   :  { %861 = vmatprep.subr.mxu1 %v1036_v1  ;;  %331 = vmatprep.mubr.f32.mxu0 %v1036_v1  ;;  %v1094_v6 = vld [vmem:[#allocation5] sm:$0xff]  ;;  %v209_v7 = vld [vmem:[#allocation5 + $0x10] sm:$0xff]  ;;  %s1038_s1 = smov 90   ;;  %v1105_v9 = vld [vmem:[#allocation5 + $0x18] sm:$0xff]  ;;  %s1039_s2 = smov 91   ;;  %vm1046_vm2 = vmmov 0  }
  0x24   :  { %v1081_v2 = vshrl.u32 %v45_v0, 7  ;;  %215 = vrot.lane.b32.xlu0 %v1092_v5, %s1038_s1  ;;  %213 = vrot.lane.b32.xlu1 %v1094_v6, %s1038_s1  ;;  %v1103_v8 = vld [vmem:[#allocation5 + $0x20] sm:$0xff]  ;;  %59 = vst.msk [vmem:[#allocation2 + $0x10] sm:$0xff] %vm52_vm0, %v209_v7  ;;  %s1040_s28 = smov 92   ;;  %s1041_s29 = smov 108   ;;  %v581_v11 = vld [vmem:[#allocation5 + $0x28] sm:$0xff] }
  0x25   :  { %s1042_s30 = smov 109   ;;  %s1043_s4 = smov 110   ;;  %881 = vmatprep.mubr.msk.f32.mxu1 %vm1046_vm2, %v1036_v1  ;;  %vm219_vm3 = vcmask 736256   ;;  %vm198_vm4 = vcmask 744448   ;;  %vm177_vm5 = vcmask 752640   ;;  %vm156_vm6 = vcmask 883712  }
  0x26   :  { %vm47_vm1 = vcmp.eq.s32.totalorder %v1081_v2, 0  ;;  %s1044_s5 = smov 126   ;;  %s1045_s6 = smov 127   ;;  %vm135_vm7 = vcmask 891904   ;;  %vm114_vm8 = vcmask 900096   ;;  %vm93_vm9 = vcmask 1031168  }
  0x27   :  { %v825_v3 = vsel %vm47_vm1, 1.0, %v1036_v1  ;;  %949 = vmatprep.subr.msk.mxu0 %vm47_vm1, %v1037_v4  ;;  %s1215_s7 = sld [smem:[#allocation4]]  ;;  %vm72_vm10 = vcmask 1039360   ;;  %vm263_vm11 = vcmask 654336   ;;  %s1047_s13 = smov [#allocation10]  }
  0x28   :  { %53 = vst.msk [vmem:[#allocation2 + $0xe8] sm:$0xff] %vm52_vm0, %v825_v3  ;;  %950 = vmatpush1.msk.msra.mxu0 %vm47_vm1, %v1037_v4  ;;  %217 = vrot.lane.b32.xlu0 %v209_v7, %s1038_s1  ;;  %s832_s10 = sld [smem:[#allocation4 + $0x1]]  ;;  %s808_s14 = sshll.u32 %s1047_s13, 4  ;;  %s809_s14 = int_to_ptr.vmem [resolvable:$true] %s808_s14 }
  0x29   :  { %194 = vrot.lane.b32.xlu1 %v1092_v5, %s1039_s2  ;;  %s1001_s15 = scalar_lea.vmem %s809_s14, 768  ;;  %p1006_p11 = scmp.lt.s32.totalorder %s809_s14, %s809_s14 }
  0x2a   :  { %p1002_p10 = scmp.ne.s32.totalorder %s809_s14, %s1001_s15  ;;  %p1007_p12 = scmp.lt.s32.totalorder %s1001_s15, %s1001_s15 }
  0x2b   :  { %v1145_v12 = vld [vmem:[#allocation2 + $0x10] sm:$0xff] }
  0x2c   :  { %196 = vrot.lane.b32.xlu0 %v209_v7, %s1039_s2  ;;  %438 = vst.msk [vmem:[#allocation2 + $0x10] sm:$0xff] %vm52_vm0, %v581_v11  ;;  %p1008_p13 = por %p1007_p12, %p1006_p11 }
  0x2d   :  { %192 = vrot.lane.b32.xlu1 %v1094_v6, %s1039_s2  ;;  %s826_s8 = sshll.u32 %s1215_s7, 3 }
  0x2e   :  { %s231_s9 = scalar_lea.vmem [#allocation8], %s826_s8  ;;  %s833_s11 = sshll.u32 %s832_s10, 3 }
  0x2f   :  { %v1111_v10 = vld [vmem:[#allocation2 + $0xe8] sm:$0xff]  ;;  %v232_v60 = vld [vmem:[%s231_s9] sm:$0xff]  ;;  %s602_s12 = scalar_lea.vmem [#allocation8], %s833_s11  ;;  %p1009_p0 = pnand %p1008_p13, %p1002_p10 }
  0x30   :  { %862 = vmatpush3.msra.mxu1 %v1111_v10  ;;  %173 = vrot.lane.b32.xlu0 %v1092_v5, %s1040_s28 }
  0x31   :  { %863 = vmatprep.subr.mxu1 %v1036_v1  ;;  %175 = vrot.lane.b32.xlu1 %v209_v7, %s1040_s28 }
  0x34   :  { %171 = vrot.lane.b32.xlu0 %v1094_v6, %s1040_s28 }
  0x35   :  { %152 = vrot.lane.b32.xlu1 %v1092_v5, %s1041_s29 }
  0x38   :  { %154 = vrot.lane.b32.xlu0 %v209_v7, %s1041_s29 }
  0x39   :  { %150 = vrot.lane.b32.xlu1 %v1094_v6, %s1041_s29 }
  0x3c   :  { %131 = vrot.lane.b32.xlu0 %v1092_v5, %s1042_s30 }
  0x3d   :  { %133 = vrot.lane.b32.xlu1 %v209_v7, %s1042_s30 }
  0x40   :  { %129 = vrot.lane.b32.xlu0 %v1094_v6, %s1042_s30 }
  0x41   :  { %110 = vrot.lane.b32.xlu1 %v1092_v5, %s1043_s4 }
  0x44   :  { %112 = vrot.lane.b32.xlu0 %v209_v7, %s1043_s4 }
  0x45   :  { %108 = vrot.lane.b32.xlu1 %v1094_v6, %s1043_s4 }
  0x48   :  { %89 = vrot.lane.b32.xlu0 %v1092_v5, %s1044_s5 }
  0x49   :  { %91 = vrot.lane.b32.xlu1 %v209_v7, %s1044_s5 }
  0x4c   :  { %87 = vrot.lane.b32.xlu0 %v1094_v6, %s1044_s5 }
  0x4d   :  { %68 = vrot.lane.b32.xlu1 %v1092_v5, %s1045_s6 }
  0x50   :  { %70 = vrot.lane.b32.xlu0 %v209_v7, %s1045_s6 }
  0x51   :  { %66 = vrot.lane.b32.xlu1 %v1094_v6, %s1045_s6 }
  0x54   :  { %587 = vrot.lane.b32.xlu0 %v1103_v8, %s1038_s1 }
  0x55   :  { %589 = vrot.lane.b32.xlu1 %v581_v11, %s1038_s1 }
  0x58   :  { %585 = vrot.lane.b32.xlu0 %v1105_v9, %s1038_s1 }
  0x59   :  { %567 = vrot.lane.b32.xlu1 %v1103_v8, %s1039_s2 }
  0x5c   :  { %569 = vrot.lane.b32.xlu0 %v581_v11, %s1039_s2 }
  0x5d   :  { %565 = vrot.lane.b32.xlu1 %v1105_v9, %s1039_s2 }
  0x60   :  { %547 = vrot.lane.b32.xlu0 %v1103_v8, %s1040_s28 }
  0x61   :  { %549 = vrot.lane.b32.xlu1 %v581_v11, %s1040_s28 }
  0x64   :  { %545 = vrot.lane.b32.xlu0 %v1105_v9, %s1040_s28 }
  0x65   :  { %527 = vrot.lane.b32.xlu1 %v1103_v8, %s1041_s29 }
  0x68   :  { %529 = vrot.lane.b32.xlu0 %v581_v11, %s1041_s29 }
  0x69   :  { %525 = vrot.lane.b32.xlu1 %v1105_v9, %s1041_s29 }
  0x6c   :  { %507 = vrot.lane.b32.xlu0 %v1103_v8, %s1042_s30 }
  0x6d   :  { %509 = vrot.lane.b32.xlu1 %v581_v11, %s1042_s30 }
  0x70   :  { %505 = vrot.lane.b32.xlu0 %v1105_v9, %s1042_s30 }
  0x71   :  { %487 = vrot.lane.b32.xlu1 %v1103_v8, %s1043_s4 }
  0x74   :  { %489 = vrot.lane.b32.xlu0 %v581_v11, %s1043_s4 }
  0x75   :  { %485 = vrot.lane.b32.xlu1 %v1105_v9, %s1043_s4 }
  0x78   :  { %467 = vrot.lane.b32.xlu0 %v1103_v8, %s1044_s5 }
  0x79   :  { %469 = vrot.lane.b32.xlu1 %v581_v11, %s1044_s5 }
  0x7c   :  { %465 = vrot.lane.b32.xlu0 %v1105_v9, %s1044_s5 }
  0x7d   :  { %447 = vrot.lane.b32.xlu1 %v1103_v8, %s1045_s6 }
  0x80   :  { %449 = vrot.lane.b32.xlu0 %v581_v11, %s1045_s6 }
  0x81   :  { %445 = vrot.lane.b32.xlu1 %v1105_v9, %s1045_s6 }
  0x96   :  { %v216_v13 = vpop.permute.xlu0 %215  ;;  %v214_v14 = vpop.permute.xlu1 %213 }
  0x97   :  { %v220_v18 = vsel %vm219_vm3, %v214_v14, %v216_v13 }
  0x9a   :  { %v218_v15 = vpop.permute.xlu0 %217 }
  0x9b   :  { %v195_v16 = vpop.permute.xlu1 %194  ;;  %v221_v17 = vsel %vm219_vm3, %v216_v13, %v218_v15  ;;  %227 = vst.msk [vmem:[#allocation2 + $0xd0] sm:$0xff] %vm52_vm0, %v218_v15 }
  0x9c   :  { %281 = vmatprep.subr.mxu0 %v221_v17 }
  0x9d   :  { %282 = vmatpush1.msra.mxu0 %v220_v18 }
  0x9e   :  { %v197_v19 = vpop.permute.xlu0 %196 }
  0x9f   :  { %v193_v20 = vpop.permute.xlu1 %192  ;;  %v200_v21 = vsel %vm198_vm4, %v195_v16, %v197_v19  ;;  %206 = vst.msk [vmem:[#allocation2 + $0xb8] sm:$0xff] %vm52_vm0, %v197_v19 }
  0xa0   :  { %v199_v22 = vsel %vm198_vm4, %v193_v20, %v195_v16  ;;  %283 = vmatprep.subr.mxu0 %v200_v21 }
  0xa1   :  { %284 = vmatpush1.msra.mxu0 %v199_v22 }
  0xa2   :  { %v174_v24 = vpop.permute.xlu0 %173  ;;  %v259_v25 = vld [vmem:[#allocation2 + $0xd0] sm:$0xff] }
  0xa3   :  { %v176_v23 = vpop.permute.xlu1 %175  ;;  %864 = vmatpush3.msra.mxu1 %v259_v25 }
  0xa4   :  { %185 = vst.msk [vmem:[#allocation2 + $0xa0] sm:$0xff] %vm52_vm0, %v176_v23  ;;  %v179_v26 = vsel %vm177_vm5, %v174_v24, %v176_v23  ;;  %865 = vmatprep.subr.mxu1 %v1036_v1 }
  0xa5   :  { %285 = vmatprep.subr.mxu0 %v179_v26 }
  0xa6   :  { %v172_v27 = vpop.permute.xlu0 %171  ;;  %v256_v29 = vld [vmem:[#allocation2 + $0xb8] sm:$0xff] }
  0xa7   :  { %v153_v28 = vpop.permute.xlu1 %152  ;;  %v178_v30 = vsel %vm177_vm5, %v172_v27, %v174_v24  ;;  %866 = vmatpush3.msra.mxu1 %v256_v29 }
  0xa8   :  { %867 = vmatprep.subr.mxu1 %v1036_v1  ;;  %286 = vmatpush1.msra.mxu0 %v178_v30 }
  0xaa   :  { %v155_v31 = vpop.permute.xlu0 %154 }
  0xab   :  { %v151_v32 = vpop.permute.xlu1 %150  ;;  %v253_v33 = vld [vmem:[#allocation2 + $0xa0] sm:$0xff]  ;;  %v158_v34 = vsel %vm156_vm6, %v153_v28, %v155_v31  ;;  %164 = vst.msk [vmem:[#allocation2 + $0x88] sm:$0xff] %vm52_vm0, %v155_v31 }
  0xac   :  { %v157_v35 = vsel %vm156_vm6, %v151_v32, %v153_v28  ;;  %868 = vmatpush3.msra.mxu1 %v253_v33  ;;  %287 = vmatprep.subr.mxu0 %v158_v34 }
  0xad   :  { %869 = vmatprep.subr.mxu1 %v1036_v1  ;;  %288 = vmatpush1.msra.mxu0 %v157_v35 }
  0xae   :  { %v132_v37 = vpop.permute.xlu0 %131 }
  0xaf   :  { %v134_v36 = vpop.permute.xlu1 %133 }
  0xb0   :  { %143 = vst.msk [vmem:[#allocation2 + $0x70] sm:$0xff] %vm52_vm0, %v134_v36  ;;  %v137_v38 = vsel %vm135_vm7, %v132_v37, %v134_v36 }
  0xb1   :  { %289 = vmatprep.subr.mxu0 %v137_v38 }
  0xb2   :  { %v130_v39 = vpop.permute.xlu0 %129  ;;  %v250_v41 = vld [vmem:[#allocation2 + $0x88] sm:$0xff] }
  0xb3   :  { %v111_v40 = vpop.permute.xlu1 %110  ;;  %v136_v42 = vsel %vm135_vm7, %v130_v39, %v132_v37  ;;  %870 = vmatpush3.msra.mxu1 %v250_v41 }
  0xb4   :  { %871 = vmatprep.subr.mxu1 %v1036_v1  ;;  %290 = vmatpush1.msra.mxu0 %v136_v42 }
  0xb6   :  { %v113_v43 = vpop.permute.xlu0 %112 }
  0xb7   :  { %v109_v44 = vpop.permute.xlu1 %108  ;;  %v247_v45 = vld [vmem:[#allocation2 + $0x70] sm:$0xff]  ;;  %v116_v46 = vsel %vm114_vm8, %v111_v40, %v113_v43  ;;  %122 = vst.msk [vmem:[#allocation2 + $0x58] sm:$0xff] %vm52_vm0, %v113_v43 }
  0xb8   :  { %v115_v47 = vsel %vm114_vm8, %v109_v44, %v111_v40  ;;  %872 = vmatpush3.msra.mxu1 %v247_v45  ;;  %291 = vmatprep.subr.mxu0 %v116_v46 }
  0xb9   :  { %873 = vmatprep.subr.mxu1 %v1036_v1  ;;  %292 = vmatpush1.msra.mxu0 %v115_v47 }
  0xba   :  { %v90_v49 = vpop.permute.xlu0 %89 }
  0xbb   :  { %v92_v48 = vpop.permute.xlu1 %91 }
  0xbc   :  { %101 = vst.msk [vmem:[#allocation2 + $0x40] sm:$0xff] %vm52_vm0, %v92_v48  ;;  %v95_v50 = vsel %vm93_vm9, %v90_v49, %v92_v48  ;;  %v603_v48 = vld [vmem:[%s602_s12] sm:$0xff] }
  0xbd   :  { %293 = vmatprep.subr.mxu0 %v95_v50  ;;  %v606_v50 = vld [vmem:[#allocation2 + $0x10] sm:$0xff] }
  0xbe   :  { %v88_v51 = vpop.permute.xlu0 %87  ;;  %v244_v53 = vld [vmem:[#allocation2 + $0x58] sm:$0xff] }
  0xbf   :  { %v69_v52 = vpop.permute.xlu1 %68  ;;  %v94_v54 = vsel %vm93_vm9, %v88_v51, %v90_v49  ;;  %874 = vmatpush3.msra.mxu1 %v244_v53 }
  0xc0   :  { %875 = vmatprep.subr.mxu1 %v1036_v1  ;;  %294 = vmatpush1.msra.mxu0 %v94_v54 }
  0xc2   :  { %v71_v55 = vpop.permute.xlu0 %70 }
  0xc3   :  { %v67_v56 = vpop.permute.xlu1 %66  ;;  %v241_v57 = vld [vmem:[#allocation2 + $0x40] sm:$0xff]  ;;  %v74_v58 = vsel %vm72_vm10, %v69_v52, %v71_v55  ;;  %80 = vst.msk [vmem:[#allocation2 + $0x28] sm:$0xff] %vm52_vm0, %v71_v55 }
  0xc4   :  { %v73_v59 = vsel %vm72_vm10, %v67_v56, %v69_v52  ;;  %876 = vmatpush3.msra.mxu1 %v241_v57  ;;  %295 = vmatprep.subr.mxu0 %v74_v58 }
  0xc5   :  { %877 = vmatprep.subr.mxu1 %v1036_v1  ;;  %296 = vmatpush1.msra.mxu0 %v73_v59 }
  0xc6   :  { %v588_v61 = vpop.permute.xlu0 %587  ;;  %297 = vmatprep.subr.mxu0 %v1092_v5 }
  0xc7   :  { %v590_v62 = vpop.permute.xlu1 %589  ;;  %298 = vmatpush1.msra.mxu0 %v1094_v6 }
  0xc8   :  { %v592_v63 = vsel %vm219_vm3, %v588_v61, %v590_v62  ;;  %598 = vst.msk [vmem:[#allocation2 + $0xd0] sm:$0xff] %vm52_vm0, %v590_v62  ;;  %827 = vmatmul.mubr.msk.f32.vlgmr.msra.gmra.mxu0 %vm263_vm11, %v232_v60  ;;  %951 = vmatprep.subr.msk.mxu0 %vm47_vm1, %v1037_v4 }
  0xc9   :  { %952 = vmatpush1.msk.msra.mxu0 %vm47_vm1, %v1037_v4  ;;  %701 = vmatprep.mubr.f32.mxu0 %v1036_v1 }
  0xca   :  { %v586_v0 = vpop.permute.xlu0 %585  ;;  %v238_v5 = vld [vmem:[#allocation2 + $0x28] sm:$0xff]  ;;  %651 = vmatprep.subr.mxu0 %v592_v63 }
  0xcb   :  { %v568_v3 = vpop.permute.xlu1 %567  ;;  %v591_v7 = vsel %vm219_vm3, %v586_v0, %v588_v61  ;;  %878 = vmatpush3.msra.mxu1 %v238_v5 }
  0xcc   :  { %879 = vmatprep.subr.mxu1 %v1036_v1  ;;  %652 = vmatpush1.msra.mxu0 %v591_v7 }
  0xcd   :  { %880 = vmatpush3.msra.mxu1 %v1145_v12 }
  0xce   :  { %v570_v6 = vpop.permute.xlu0 %569  ;;  %884 = vmatprep.subr.mxu1 %v1036_v1  ;;  %882 = vmatmul.mubr.msk.f32.vlgmr.msra.gmra.mxu1 %vm263_vm11, %v232_v60 }
  0xcf   :  { %v566_v11 = vpop.permute.xlu1 %565  ;;  %v630_v2 = vld [vmem:[#allocation2 + $0xd0] sm:$0xff]  ;;  %v572_v4 = vsel %vm198_vm4, %v568_v3, %v570_v6  ;;  %578 = vst.msk [vmem:[#allocation2 + $0xb8] sm:$0xff] %vm52_vm0, %v570_v6  ;;  %885 = vmatpush3.msra.mxu1 %v1111_v10  ;;  %904 = vmatprep.mubr.msk.f32.mxu1 %vm1046_vm2, %v1036_v1 }
  0xd0   :  { %v571_v13 = vsel %vm198_vm4, %v566_v11, %v568_v3  ;;  %886 = vmatprep.subr.mxu1 %v1036_v1  ;;  %653 = vmatprep.subr.mxu0 %v572_v4 }
  0xd1   :  { %887 = vmatpush3.msra.mxu1 %v630_v2  ;;  %654 = vmatpush1.msra.mxu0 %v571_v13 }
  0xd2   :  { %v548_v12 = vpop.permute.xlu0 %547  ;;  %888 = vmatprep.subr.mxu1 %v1036_v1 }
  0xd3   :  { %v550_v14 = vpop.permute.xlu1 %549 }
  0xd4   :  { %v552_v15 = vsel %vm177_vm5, %v548_v12, %v550_v14  ;;  %558 = vst.msk [vmem:[#allocation2 + $0xa0] sm:$0xff] %vm52_vm0, %v550_v14 }
  0xd5   :  { %655 = vmatprep.subr.mxu0 %v552_v15 }
  0xd6   :  { %v546_v16 = vpop.permute.xlu0 %545  ;;  %v627_v10 = vld [vmem:[#allocation2 + $0xb8] sm:$0xff] }
  0xd7   :  { %v528_v17 = vpop.permute.xlu1 %527  ;;  %v551_v18 = vsel %vm177_vm5, %v546_v16, %v548_v12  ;;  %889 = vmatpush3.msra.mxu1 %v627_v10 }
  0xd8   :  { %890 = vmatprep.subr.mxu1 %v1036_v1  ;;  %656 = vmatpush1.msra.mxu0 %v551_v18 }
  0xda   :  { %v530_v19 = vpop.permute.xlu0 %529 }
  0xdb   :  { %v526_v20 = vpop.permute.xlu1 %525  ;;  %v624_v21 = vld [vmem:[#allocation2 + $0xa0] sm:$0xff]  ;;  %v532_v22 = vsel %vm156_vm6, %v528_v17, %v530_v19  ;;  %538 = vst.msk [vmem:[#allocation2 + $0x88] sm:$0xff] %vm52_vm0, %v530_v19 }
  0xdc   :  { %v531_v23 = vsel %vm156_vm6, %v526_v20, %v528_v17  ;;  %891 = vmatpush3.msra.mxu1 %v624_v21  ;;  %657 = vmatprep.subr.mxu0 %v532_v22 }
  0xdd   :  { %892 = vmatprep.subr.mxu1 %v1036_v1  ;;  %658 = vmatpush1.msra.mxu0 %v531_v23 }
  0xde   :  { %v508_v24 = vpop.permute.xlu0 %507 }
  0xdf   :  { %v510_v25 = vpop.permute.xlu1 %509 }
  0xe0   :  { %v512_v26 = vsel %vm135_vm7, %v508_v24, %v510_v25  ;;  %518 = vst.msk [vmem:[#allocation2 + $0x70] sm:$0xff] %vm52_vm0, %v510_v25 }
  0xe1   :  { %659 = vmatprep.subr.mxu0 %v512_v26 }
  0xe2   :  { %v506_v27 = vpop.permute.xlu0 %505  ;;  %v621_v29 = vld [vmem:[#allocation2 + $0x88] sm:$0xff] }
  0xe3   :  { %v488_v28 = vpop.permute.xlu1 %487  ;;  %v511_v30 = vsel %vm135_vm7, %v506_v27, %v508_v24  ;;  %893 = vmatpush3.msra.mxu1 %v621_v29 }
  0xe4   :  { %894 = vmatprep.subr.mxu1 %v1036_v1  ;;  %660 = vmatpush1.msra.mxu0 %v511_v30 }
  0xe6   :  { %v490_v31 = vpop.permute.xlu0 %489 }
  0xe7   :  { %v486_v32 = vpop.permute.xlu1 %485  ;;  %v618_v33 = vld [vmem:[#allocation2 + $0x70] sm:$0xff]  ;;  %v492_v34 = vsel %vm114_vm8, %v488_v28, %v490_v31  ;;  %498 = vst.msk [vmem:[#allocation2 + $0x58] sm:$0xff] %vm52_vm0, %v490_v31 }
  0xe8   :  { %v491_v35 = vsel %vm114_vm8, %v486_v32, %v488_v28  ;;  %895 = vmatpush3.msra.mxu1 %v618_v33  ;;  %661 = vmatprep.subr.mxu0 %v492_v34 }
  0xe9   :  { %896 = vmatprep.subr.mxu1 %v1036_v1  ;;  %662 = vmatpush1.msra.mxu0 %v491_v35 }
  0xea   :  { %v468_v36 = vpop.permute.xlu0 %467 }
  0xeb   :  { %v470_v37 = vpop.permute.xlu1 %469 }
  0xec   :  { %v472_v38 = vsel %vm93_vm9, %v468_v36, %v470_v37  ;;  %478 = vst.msk [vmem:[#allocation2 + $0x40] sm:$0xff] %vm52_vm0, %v470_v37 }
  0xed   :  { %663 = vmatprep.subr.mxu0 %v472_v38 }
  0xee   :  { %v466_v39 = vpop.permute.xlu0 %465  ;;  %v615_v41 = vld [vmem:[#allocation2 + $0x58] sm:$0xff] }
  0xef   :  { %v448_v40 = vpop.permute.xlu1 %447  ;;  %v471_v42 = vsel %vm93_vm9, %v466_v39, %v468_v36  ;;  %897 = vmatpush3.msra.mxu1 %v615_v41 }
  0xf0   :  { %898 = vmatprep.subr.mxu1 %v1036_v1  ;;  %664 = vmatpush1.msra.mxu0 %v471_v42 }
  0xf2   :  { %v450_v43 = vpop.permute.xlu0 %449 }
  0xf3   :  { %v446_v44 = vpop.permute.xlu1 %445  ;;  %v612_v45 = vld [vmem:[#allocation2 + $0x40] sm:$0xff]  ;;  %v452_v46 = vsel %vm72_vm10, %v448_v40, %v450_v43  ;;  %458 = vst.msk [vmem:[#allocation2 + $0x28] sm:$0xff] %vm52_vm0, %v450_v43 }
  0xf4   :  { %v451_v47 = vsel %vm72_vm10, %v446_v44, %v448_v40  ;;  %899 = vmatpush3.msra.mxu1 %v612_v45  ;;  %665 = vmatprep.subr.mxu0 %v452_v46 }
  0xf5   :  { %900 = vmatprep.subr.mxu1 %v1036_v1  ;;  %666 = vmatpush1.msra.mxu0 %v451_v47 }
  0xf6   :  { %667 = vmatprep.subr.mxu0 %v1103_v8 }
  0xf7   :  { %668 = vmatpush1.msra.mxu0 %v1105_v9 }
  0xf8   :  { %834 = vmatmul.mubr.msk.f32.vlgmr.msra.gmra.mxu0 %vm263_vm11, %v603_v48 }
  0xfa   :  { %v609_v49 = vld [vmem:[#allocation2 + $0x28] sm:$0xff] }
  0xfb   :  { %901 = vmatpush3.msra.mxu1 %v609_v49 }
  0xfc   :  { %902 = vmatprep.subr.mxu1 %v1036_v1 }
  0xfd   :  { %903 = vmatpush3.msra.mxu1 %v606_v50 }
  0xfe   :  { %905 = vmatmul.mubr.msk.f32.vlgmr.msra.gmra.mxu1 %vm263_vm11, %v603_v48 }
 0x188   :  { %v333_v51 = vpop.f32.mrf.mxu0 }
 0x189   :  { %v829_v52 = vmul.f32 -1.442695, %v333_v51 }
 0x18a   :  { %v335_v53 = vpop.f32.mrf.mxu0 }
 0x18b   :  { %925 = vpow2.f32 %v829_v52  ;;  %v830_v54 = vmul.f32 -1.442695, %v335_v53 }
 0x18d   :  { %927 = vpow2.f32 %v830_v54 }
 0x18e   :  { %v404_v55 = vpop.f32.mrf.mxu1 }
 0x18f   :  { %v831_v8 = vmul.f32 -1.442695, %v404_v55 }
 0x190   :  { %v883_v56 = vpop.f32.mrf.mxu1 }
 0x191   :  { %929 = vpow2.f32 %v831_v8 }
 0x198   :  { %v926_v9 = vpop.eup %925 }
 0x199   :  { %v417_v57 = vadd.f32 1.0, %v926_v9 }
 0x19a   :  { %v928_v58 = vpop.eup %927 }
 0x19b   :  { %931 = vrcp.f32 %v417_v57  ;;  %v418_v59 = vadd.f32 1.0, %v928_v58 }
 0x19d   :  { %933 = vrcp.f32 %v418_v59 }
 0x19e   :  { %v930_v1 = vpop.eup %929 }
 0x19f   :  { %v419_v60 = vadd.f32 1.0, %v930_v1 }
 0x1a1   :  { %935 = vrcp.f32 %v419_v60 }
 0x1a8   :  { %v932_v61 = vpop.eup %931 }
 0x1a9   :  { %v426_v62 = vmul.f32 %v932_v61, %v333_v51 }
 0x1aa   :  { %v934_v63 = vpop.eup %933 }
 0x1ab   :  { %429 = vst [vmem:[#allocation10] sm:$0xff] %v426_v62  ;;  %v427_v0 = vmul.f32 %v934_v63, %v335_v53 }
 0x1ad   :  { %430 = vst [vmem:[#allocation10 + $0x8] sm:$0xff] %v427_v0 }
 0x1ae   :  { %v936_v3 = vpop.eup %935 }
 0x1af   :  { %v428_v5 = vmul.f32 %v936_v3, %v404_v55 }
 0x1b1   :  { %431 = vst.msk [vmem:[#allocation10 + $0x10] sm:$0xff] %vm52_vm0, %v428_v5 }
 0x1b8   :  { %v703_v7 = vpop.f32.mrf.mxu0 }
 0x1b9   :  { %v836_v6 = vmul.f32 -1.442695, %v703_v7 }
 0x1ba   :  { %v705_v11 = vpop.f32.mrf.mxu0 }
 0x1bb   :  { %937 = vpow2.f32 %v836_v6  ;;  %v837_v2 = vmul.f32 -1.442695, %v705_v11 }
 0x1bd   :  { %939 = vpow2.f32 %v837_v2 }
 0x1be   :  { %v774_v4 = vpop.f32.mrf.mxu1 }
 0x1bf   :  { %v838_v13 = vmul.f32 -1.442695, %v774_v4 }
 0x1c0   :  { %v906_v12 = vpop.f32.mrf.mxu1 }
 0x1c1   :  { %941 = vpow2.f32 %v838_v13 }
 0x1c8   :  { %v938_v14 = vpop.eup %937 }
 0x1c9   :  { %v787_v15 = vadd.f32 1.0, %v938_v14 }
 0x1ca   :  { %v940_v16 = vpop.eup %939 }
 0x1cb   :  { %943 = vrcp.f32 %v787_v15  ;;  %v788_v17 = vadd.f32 1.0, %v940_v16 }
 0x1cd   :  { %945 = vrcp.f32 %v788_v17 }
 0x1ce   :  { %v942_v10 = vpop.eup %941 }
 0x1cf   :  { %v789_v18 = vadd.f32 1.0, %v942_v10 }
 0x1d1   :  { %947 = vrcp.f32 %v789_v18 }
 0x1d8   :  { %v944_v19 = vpop.eup %943 }
 0x1d9   :  { %v796_v20 = vmul.f32 %v944_v19, %v703_v7 }
 0x1da   :  { %v946_v21 = vpop.eup %945 }
 0x1db   :  { %800 = vst [vmem:[#allocation10 + $0x18] sm:$0xff] %v796_v20  ;;  %v797_v22 = vmul.f32 %v946_v21, %v705_v11 }
 0x1dd   :  { %801 = vst [vmem:[#allocation10 + $0x20] sm:$0xff] %v797_v22 }
 0x1de   :  { %v948_v23 = vpop.eup %947 }
 0x1df   :  { %v798_v24 = vmul.f32 %v948_v23, %v774_v4 }
 0x1e1   :  { %802 = vst.msk [vmem:[#allocation10 + $0x28] sm:$0xff] %vm52_vm0, %v798_v24 }
 0x1e2   :  { %1012 = shalt.err (!%p1009_p0)
}
 0x1e3   :  { %814 = dma.vmem_to_hbm [thread:$0]  %s809_s14, 768, %s1292_s3, [#allocation7], %s1031_s18, %s1031_s18, %s1032_s19  }
 0x1e4   :  { %1027 = dma.done.wait [#allocation7], 768  }
 0x1e5   :  { %1028 = vsyncadd [#allocation7], 4294966528 }
 0x1e6   :  { %818 = vsyncpa [#allocation6], 1 }
 0x1e7   :  { %819 = vsyncpa [#allocation9], 1 }
 0x1e8   :  { %820 = vsyncpa [#allocation7], 1 }

</bundles_post_ra>
